<compile_context>
chip_gen: v6e
topology: v6e:2x2x1
jax: 0.10.0
libtpu: 0.0.40
codegen_flags: <defaults>
</compile_context>

<pallas_src>
import functools
import numpy as np
import jax
import jax.numpy as jnp
from jax.experimental import pallas as pl
from jax.experimental.pallas import tpu as pltpu


def _round_up(x, m):
    return (x + m - 1) // m * m


# ============================================================================
# Kernel 1: fused matmul   out = maybe_relu(X @ W * scale + bias [+ residual])
#           bf16 operands on the MXU, fp32 accumulator/epilogue, bf16 output.
# ============================================================================
def _make_mm_kernel(relu, has_res):
    def kernel(x_ref, w_ref, s_ref, b_ref, *rest):
        if has_res:
            r_ref, o_ref, acc_ref = rest
        else:
            o_ref, acc_ref = rest
        k = pl.program_id(2)

        @pl.when(k == 0)
        def _():
            acc_ref[...] = jnp.zeros_like(acc_ref)

        acc_ref[...] += jnp.dot(x_ref[...], w_ref[...],
                                preferred_element_type=jnp.float32)

        @pl.when(k == pl.num_programs(2) - 1)
        def _():
            y = acc_ref[...] * s_ref[...] + b_ref[...]
            if has_res:
                y = y + r_ref[...].astype(jnp.float32)
            if relu:
                y = jnp.maximum(y, 0.0)
            o_ref[...] = y.astype(o_ref.dtype)

    return kernel


@functools.partial(jax.jit, static_argnames=("relu",))
def fused_matmul(X, Wm, scale2d, bias2d, residual=None, *, relu=False):
    """X:(M,K) bf16, Wm:(K,Np) bf16, scale/bias:(1,Np) f32 -> (Mp,Np) bf16."""
    M, K = X.shape
    Np = Wm.shape[1]

    tn = 256 if Np % 256 == 0 else 128
    tm = 256 if M >= 256 else _round_up(max(M, 1), 8)
    Mp = _round_up(M, tm)
    if K % 128 == 0:
        tk = max(t for t in (512, 256, 128) if K % t == 0)
    else:
        tk = K                      # single full-extent K block (no K padding)
    nk = K // tk

    Xp = X if Mp == M else jnp.pad(X, ((0, Mp - M), (0, 0)))

    has_res = residual is not None
    args = [Xp, Wm, scale2d, bias2d]
    in_specs = [
        pl.BlockSpec((tm, tk), lambda i, j, k: (i, k)),
        pl.BlockSpec((tk, tn), lambda i, j, k: (k, j)),
        pl.BlockSpec((1, tn), lambda i, j, k: (0, j)),
        pl.BlockSpec((1, tn), lambda i, j, k: (0, j)),
    ]
    if has_res:
        Rm, Rn = residual.shape
        Rp = residual
        if Rm != Mp or Rn != Np:
            Rp = jnp.pad(residual, ((0, Mp - Rm), (0, Np - Rn)))
        args.append(Rp)
        in_specs.append(pl.BlockSpec((tm, tn), lambda i, j, k: (i, j)))

    flops = 2 * Mp * Np * K
    bytes_acc = (Xp.size + Wm.size + Mp * Np * (2 if has_res else 1)) * 2

    out = pl.pallas_call(
        _make_mm_kernel(relu, has_res),
        out_shape=jax.ShapeDtypeStruct((Mp, Np), jnp.bfloat16),
        grid_spec=pltpu.PrefetchScalarGridSpec(
            num_scalar_prefetch=0,
            grid=(Mp // tm, Np // tn, nk),
            in_specs=in_specs,
            out_specs=pl.BlockSpec((tm, tn), lambda i, j, k: (i, j)),
            scratch_shapes=[pltpu.VMEM((tm, tn), jnp.float32)],
        ),
        compiler_params=pltpu.CompilerParams(
            dimension_semantics=("parallel", "parallel", "arbitrary"),
            vmem_limit_bytes=32 * 1024 * 1024),
        cost_estimate=pl.CostEstimate(flops=flops, transcendentals=0,
                                      bytes_accessed=bytes_acc),
    )(*args)
    return out


# ============================================================================
# Kernel 2: direct 3x3 / stride-1 / pad-1 convolution (no HBM im2col).
#   Grid: (N, row-tiles, Cout-tiles, Cin-tiles[reduction]).  Each step DMAs a
#   (1, th+2, W+2, ck) halo slab from HBM (memory_space=ANY) into VMEM and
#   runs the 9 taps on the MXU, accumulating in fp32 scratch; BN scale/bias
#   (+ optional ReLU) fused in the epilogue.
# ============================================================================
def _make_conv3x3_kernel(th, wo, relu):
    def kernel(x_hbm, w_ref, s_ref, b_ref, o_ref, xslab, acc, sem):
        n = pl.program_id(0)
        h = pl.program_id(1)
        k = pl.program_id(3)
        ck = xslab.shape[-1]
        row0 = pl.multiple_of(h * th, th)
        c0 = pl.multiple_of(k * ck, ck)
        cp = pltpu.make_async_copy(
            x_hbm.at[pl.ds(n, 1), pl.ds(row0, th + 2), :, pl.ds(c0, ck)],
            xslab, sem)
        cp.start()
        cp.wait()

        @pl.when(k == 0)
        def _():
            acc[...] = jnp.zeros_like(acc)

        for dy in range(3):
            for dx in range(3):
                w_tap = w_ref[dy * 3 + dx]                    # (ck, tn)
                for r in range(th):
                    xs = xslab[0, r + dy, dx:dx + wo, :]      # (wo, ck)
                    acc[r] += jnp.dot(xs, w_tap,
                                      preferred_element_type=jnp.float32)

        @pl.when(k == pl.num_programs(3) - 1)
        def _():
            y = acc[...] * s_ref[...] + b_ref[...]
            if relu:
                y = jnp.maximum(y, 0.0)
            o_ref[0] = y.astype(o_ref.dtype)

    return kernel


@functools.partial(jax.jit, static_argnames=("relu", "out_f32", "cout"))
def conv3x3_direct(x, w_taps, scale2d, bias2d, *, relu, out_f32, cout):
    """x:(N,H,W,Cin) bf16; w_taps:(9,Cinp,Coutp) bf16; stride 1, pad 1."""
    N, H, W, Cin = x.shape
    _, Cinp, Coutp = w_taps.shape
    Ho, Wo, Wp = H, W, W + 2
    xpad = jnp.pad(x, ((0, 0), (1, 1), (1, 1), (0, Cinp - Cin)))

    tn = 256 if Coutp % 256 == 0 else 128
    ck = max(c for c in (512, 256, 128) if Cinp % c == 0)
    th = 1
    for t in (8, 4, 2):
        if Ho % t == 0 and t * Wo <= 2048:
            th = t
            break

    out_dtype = jnp.float32 if out_f32 else jnp.bfloat16
    flops = 2 * N * Ho * Wo * Coutp * Cinp * 9
    bytes_acc = (xpad.size * (Coutp // tn) + w_taps.size) * 2 \
        + N * Ho * Wo * Coutp * (4 if out_f32 else 2)

    y = pl.pallas_call(
        _make_conv3x3_kernel(th, Wo, relu),
        out_shape=jax.ShapeDtypeStruct((N, Ho, Wo, Coutp), out_dtype),
        grid_spec=pltpu.PrefetchScalarGridSpec(
            num_scalar_prefetch=0,
            grid=(N, Ho // th, Coutp // tn, Cinp // ck),
            in_specs=[
                pl.BlockSpec(memory_space=pl.ANY),                 # activation
                pl.BlockSpec((9, ck, tn), lambda n, h, j, k: (0, k, j)),
                pl.BlockSpec((1, tn), lambda n, h, j, k: (0, j)),
                pl.BlockSpec((1, tn), lambda n, h, j, k: (0, j)),
            ],
            out_specs=pl.BlockSpec((1, th, Wo, tn),
                                   lambda n, h, j, k: (n, h, 0, j)),
            scratch_shapes=[
                pltpu.VMEM((1, th + 2, Wp, ck), jnp.bfloat16),
                pltpu.VMEM((th, Wo, tn), jnp.float32),
                pltpu.SemaphoreType.DMA,
            ],
        ),
        compiler_params=pltpu.CompilerParams(
            dimension_semantics=("parallel", "parallel", "parallel",
                                 "arbitrary"),
            vmem_limit_bytes=32 * 1024 * 1024),
        cost_estimate=pl.CostEstimate(flops=flops, transcendentals=0,
                                      bytes_accessed=bytes_acc),
    )(xpad, w_taps, scale2d, bias2d)
    if Coutp != cout:
        y = y[..., :cout]
    return y


# ============================================================================
# Kernel 3: MaxPool2d(kernel=3, stride=2, padding=1), tiled over rows.
# ============================================================================
def _maxpool_kernel(x_ref, o_ref):
    r = x_ref[0]
    for t in range(1, 9):
        r = jnp.maximum(r, x_ref[t])
    o_ref[...] = r


@jax.jit
def maxpool3x3s2p1(x):
    N, H, W, C = x.shape
    Ho = (H - 1) // 2 + 1
    Wo = (W - 1) // 2 + 1
    xp = jnp.pad(x, ((0, 0), (1, 1), (1, 1), (0, 0)),
                 constant_values=-jnp.inf)
    slices = [xp[:, i:i + 2 * Ho:2, j:j + 2 * Wo:2, :]
              for i in range(3) for j in range(3)]
    stacked = jnp.stack(slices, 0).reshape(9, N * Ho * Wo, C)
    M = N * Ho * Wo
    Cp = _round_up(C, 128)
    tile_m = 512 if M >= 512 else _round_up(M, 8)
    Mp = _round_up(M, tile_m)
    if Mp != M or Cp != C:
        stacked = jnp.pad(stacked, ((0, 0), (0, Mp - M), (0, Cp - C)))
    out = pl.pallas_call(
        _maxpool_kernel,
        out_shape=jax.ShapeDtypeStruct((Mp, Cp), x.dtype),
        grid=(Mp // tile_m,),
        in_specs=[pl.BlockSpec((9, tile_m, Cp), lambda i: (0, i, 0))],
        out_specs=pl.BlockSpec((tile_m, Cp), lambda i: (i, 0)),
        compiler_params=pltpu.CompilerParams(
            dimension_semantics=("parallel",)),
    )(stacked)
    return out[:M, :C].reshape(N, Ho, Wo, C)


# ============================================================================
# Kernel 4: bilinear resize (align_corners=False), NHWC.
#   Per output row: gather the 2 contributing input rows (data-dependent
#   index_map via scalar prefetch), lerp along H with an SMEM weight, then a
#   small matmul with the (out_w, W_in) interpolation matrix along W.
# ============================================================================
def _bilinear_kernel(i0_ref, i1_ref, alpha_ref, aw_ref, xa_ref, xb_ref, o_ref):
    i = pl.program_id(1)
    a = alpha_ref[i]
    r0 = xa_ref[0, 0].astype(jnp.float32)
    r1 = xb_ref[0, 0].astype(jnp.float32)
    row = r0 + a * (r1 - r0)                                   # (Win, C)
    out = jnp.dot(aw_ref[...], row.astype(jnp.bfloat16),
                  preferred_element_type=jnp.float32)          # (out_w, C)
    o_ref[0, 0] = out.astype(o_ref.dtype)


def _interp_coeffs(in_size, out_size):
    scale = in_size / out_size
    src = np.maximum((np.arange(out_size, dtype=np.float64) + 0.5) * scale
                     - 0.5, 0.0)
    i0 = np.minimum(np.floor(src), in_size - 1).astype(np.int32)
    i1 = np.minimum(i0 + 1, in_size - 1).astype(np.int32)
    alpha = (src - i0).astype(np.float32)
    return i0, i1, alpha


def _interp_matrix(in_size, out_size, pad_to):
    i0, i1, a = _interp_coeffs(in_size, out_size)
    A = np.zeros((out_size, pad_to), np.float32)
    A[np.arange(out_size), i0] += 1.0 - a
    A[np.arange(out_size), i1] += a
    return A


@functools.partial(jax.jit, static_argnames=("out_h", "out_w"))
def bilinear_resize(x, *, out_h, out_w):
    N, H, W, C = x.shape
    if H == out_h and W == out_w:
        return x
    if H == 1 and W == 1:
        # bilinear upsample of a 1x1 map is an exact constant broadcast.
        return jnp.broadcast_to(x, (N, out_h, out_w, C))

    i0, i1, alpha = _interp_coeffs(H, out_h)
    Wp_in = max(_round_up(W, 8), 8)
    aw = _interp_matrix(W, out_w, Wp_in)
    xin = x if Wp_in == W else jnp.pad(x, ((0, 0), (0, 0), (0, Wp_in - W),
                                           (0, 0)))
    i0 = jnp.asarray(i0)
    i1 = jnp.asarray(i1)
    alpha = jnp.asarray(alpha)
    aw = jnp.asarray(aw, jnp.bfloat16)

    return pl.pallas_call(
        _bilinear_kernel,
        out_shape=jax.ShapeDtypeStruct((N, out_h, out_w, C), x.dtype),
        grid_spec=pltpu.PrefetchScalarGridSpec(
            num_scalar_prefetch=2,
            grid=(N, out_h),
            in_specs=[
                pl.BlockSpec(memory_space=pltpu.MemorySpace.SMEM),   # alpha
                pl.BlockSpec((out_w, Wp_in), lambda n, i, i0, i1: (0, 0)),
                pl.BlockSpec((1, 1, Wp_in, C),
                             lambda n, i, i0, i1: (n, i0[i], 0, 0)),
                pl.BlockSpec((1, 1, Wp_in, C),
                             lambda n, i, i0, i1: (n, i1[i], 0, 0)),
            ],
            out_specs=pl.BlockSpec((1, 1, out_w, C),
                                   lambda n, i, i0, i1: (n, i, 0, 0)),
        ),
        compiler_params=pltpu.CompilerParams(
            dimension_semantics=("parallel", "arbitrary")),
    )(i0, i1, alpha, aw, xin, xin)


# ============================================================================
# Parameter construction: fold BN, transpose/pad/cast weights once at init.
# ============================================================================
def make_conv_weight(key, cout, cin, kh, kw):
    fan_in = cin * kh * kw
    return (jax.random.normal(key, (cout, cin, kh, kw), jnp.float32)
            * np.sqrt(2.0 / fan_in)).astype(jnp.float32)


def make_bn(c):
    return dict(gamma=jnp.ones((c,), jnp.float32),
                beta=jnp.zeros((c,), jnp.float32),
                mean=jnp.zeros((c,), jnp.float32),
                var=jnp.ones((c,), jnp.float32))


def _fold_bn(bn, conv_bias=None):
    scale = bn["gamma"] / jnp.sqrt(bn["var"] + 1e-5)
    bias = bn["beta"] - bn["mean"] * scale
    if conv_bias is not None:
        bias = bias + conv_bias * scale
    return scale, bias


def pack_conv(w, bn=None, conv_bias=None, *, direct=False):
    cout, cin, kh, kw = w.shape
    coutp = _round_up(cout, 128)
    if bn is not None:
        scale, bias = _fold_bn(bn, conv_bias)
    else:
        scale = jnp.ones((cout,), jnp.float32)
        bias = conv_bias if conv_bias is not None else jnp.zeros((cout,),
                                                                 jnp.float32)
    scale = jnp.pad(scale, (0, coutp - cout)).reshape(1, coutp)
    bias = jnp.pad(bias, (0, coutp - cout)).reshape(1, coutp)
    wt = jnp.transpose(w, (2, 3, 1, 0))                  # (kh, kw, cin, cout)
    if direct:
        cinp = _round_up(cin, 128)
        wd = jnp.pad(wt.reshape(kh * kw, cin, cout),
                     ((0, 0), (0, cinp - cin),
                      (0, coutp - cout))).astype(jnp.bfloat16)
        return dict(kind="direct", w=wd, scale=scale, bias=bias,
                    cout=cout, kh=kh, kw=kw)
    wm = jnp.pad(wt.reshape(kh * kw * cin, cout),
                 ((0, 0), (0, coutp - cout))).astype(jnp.bfloat16)
    return dict(kind="mm", w=wm, scale=scale, bias=bias,
                cout=cout, kh=kh, kw=kw)


def make_layer(next_key, inplanes, planes, blocks, stride):
    width = planes * 2            # wide_resnet50_2: width_per_group = 128
    exp = 4
    layer = []
    for b in range(blocks):
        blk_stride = stride if b == 0 else 1
        blk = {"stride": blk_stride}
        blk["conv1"] = pack_conv(
            make_conv_weight(next_key(), width, inplanes, 1, 1), make_bn(width))
        blk["conv2"] = pack_conv(
            make_conv_weight(next_key(), width, width, 3, 3), make_bn(width),
            direct=(blk_stride == 1))
        blk["conv3"] = pack_conv(
            make_conv_weight(next_key(), planes * exp, width, 1, 1),
            make_bn(planes * exp))
        if b == 0 and (stride != 1 or inplanes != planes * exp):
            blk["ds"] = pack_conv(
                make_conv_weight(next_key(), planes * exp, inplanes, 1, 1),
                make_bn(planes * exp))
        layer.append(blk)
        inplanes = planes * exp
    return layer, inplanes


def init_params(key, num_classes):
    counter = [0]

    def nk():
        counter[0] += 1
        return jax.random.fold_in(key, counter[0])

    P = {}
    # pretrained-architecture stem: 3-channel 7x7 / stride 2 conv.
    P["stem"] = pack_conv(make_conv_weight(nk(), 64, 3, 7, 7), make_bn(64))
    inpl = 64
    P["layer1"], inpl = make_layer(nk, inpl, 64, 3, 1)
    P["layer2"], inpl = make_layer(nk, inpl, 128, 4, 2)
    P["layer3"], inpl = make_layer(nk, inpl, 256, 6, 2)
    P["layer4"], inpl = make_layer(nk, inpl, 512, 3, 2)
    P["cls"] = pack_conv(make_conv_weight(nk(), 128, 2048 + 256, 3, 3),
                         make_bn(128),
                         conv_bias=jnp.zeros((128,), jnp.float32), direct=True)
    P["final"] = pack_conv(make_conv_weight(nk(), num_classes, 128, 3, 3),
                           None, conv_bias=jnp.zeros((num_classes,),
                                                     jnp.float32), direct=True)
    return P


# ============================================================================
# Forward pass (skip=True, classif=True)
# ============================================================================
@functools.partial(jax.jit, static_argnames=("kh", "kw", "stride", "padding",
                                             "relu", "cout"))
def conv_im2col(x, wm, scale2d, bias2d, residual, *, kh, kw, stride, padding,
                relu, cout):
    N, H, W, Cin = x.shape
    Ho = (H + 2 * padding - kh) // stride + 1
    Wo = (W + 2 * padding - kw) // stride + 1
    xp = x
    if padding:
        xp = jnp.pad(x, ((0, 0), (padding, padding), (padding, padding),
                         (0, 0)))
    if kh == 1 and kw == 1 and stride == 1:
        X = x.reshape(N * Ho * Wo, Cin)
    else:
        cols = [xp[:, i:i + stride * Ho:stride, j:j + stride * Wo:stride, :]
                for i in range(kh) for j in range(kw)]
        X = jnp.stack(cols, axis=3).reshape(N * Ho * Wo, kh * kw * Cin)
    R = None if residual is None else residual.reshape(N * Ho * Wo, -1)
    Y = fused_matmul(X, wm, scale2d, bias2d, R, relu=relu)
    return Y[:N * Ho * Wo, :cout].reshape(N, Ho, Wo, cout)


def conv_apply(x, cp, *, stride=1, padding=0, relu=False, residual=None,
               out_f32=False):
    if cp["kind"] == "direct":
        assert stride == 1 and padding == 1 and residual is None
        return conv3x3_direct(x, cp["w"], cp["scale"], cp["bias"],
                              relu=relu, out_f32=out_f32, cout=cp["cout"])
    assert not out_f32
    return conv_im2col(x, cp["w"], cp["scale"], cp["bias"], residual,
                       kh=cp["kh"], kw=cp["kw"], stride=stride,
                       padding=padding, relu=relu, cout=cp["cout"])


def bottleneck_forward(x, blk):
    stride = blk["stride"]
    if "ds" in blk:
        identity = conv_apply(x, blk["ds"], stride=stride, padding=0,
                              relu=False)
    else:
        identity = x
    out = conv_apply(x, blk["conv1"], stride=1, padding=0, relu=True)
    out = conv_apply(out, blk["conv2"], stride=stride, padding=1, relu=True)
    # residual add + final ReLU fused into the matmul epilogue
    out = conv_apply(out, blk["conv3"], stride=1, padding=0, relu=True,
                     residual=identity)
    return out


def run_layer(x, layer):
    for blk in layer:
        x = bottleneck_forward(x, blk)
    return x


def fcn_wideresnet50_forward(params, x_nchw):
    x = jnp.transpose(x_nchw, (0, 2, 3, 1)).astype(jnp.bfloat16)
    H, W = x.shape[1], x.shape[2]

    fv = conv_apply(x, params["stem"], stride=2, padding=3, relu=True)
    fv_init = maxpool3x3s2p1(fv)

    fv1 = run_layer(fv_init, params["layer1"])
    fv2 = run_layer(fv1, params["layer2"])
    fv3 = run_layer(fv2, params["layer3"])
    fv4 = run_layer(fv3, params["layer4"])

    up1 = bilinear_resize(fv1, out_h=H, out_w=W)
    up2 = bilinear_resize(fv2, out_h=H, out_w=W)
    up4 = bilinear_resize(fv4, out_h=H, out_w=W)

    # torch: fv_final = cat([interp(fv1), interp(fv4)], dim=1).detach()
    fv_final = jax.lax.stop_gradient(jnp.concatenate([up1, up4], axis=-1))

    # classifier1: Conv(2304->128, 3x3, bias) + BN + ReLU + Dropout2d(0.5)
    # TODO(synk): Dropout2d(0.5) implemented as eval-mode identity; training
    # mode stochastic channel dropout has no deterministic equivalent here.
    c1 = conv_apply(fv_final, params["cls"], stride=1, padding=1, relu=True)
    out = conv_apply(c1, params["final"], stride=1, padding=1, relu=False,
                     out_f32=True)

    to_nchw = lambda a: jnp.transpose(a, (0, 3, 1, 2)).astype(jnp.float32)
    return to_nchw(out), to_nchw(up2), to_nchw(up4)


# ----------------------------------------------------------------------------
if __name__ == "__main__":
    num_classes = 5
    key = jax.random.PRNGKey(0)
    params = init_params(key, num_classes)
    # pretrained-architecture stem expects 3 input channels (NCHW).
    x = jax.random.normal(jax.random.fold_in(key, 12345),
                          (2, 3, 16, 16), jnp.float32)

    out, up2, up4 = fcn_wideresnet50_forward(params, x)
    out, up2, up4 = jax.block_until_ready((out, up2, up4))

    assert out.shape == (2, num_classes, 16, 16), out.shape
    assert up2.shape == (2, 512, 16, 16), up2.shape
    assert up4.shape == (2, 2048, 16, 16), up4.shape
    assert jnp.isfinite(out).all() and jnp.isfinite(up2).all() \
        and jnp.isfinite(up4).all()
    print("KERNEL_OK")
</pallas_src>

<mosaic_0001>
module attributes {stable_mosaic.version = 11 : i64} {
  func.func @kernel(%arg0: i32, %arg1: i32, %arg2: i32, %arg3: memref<128x147xbf16, #tpu.memory_space<vmem>>, %arg4: memref<147x128xbf16, #tpu.memory_space<vmem>>, %arg5: memref<1x128xf32, #tpu.memory_space<vmem>>, %arg6: memref<1x128xf32, #tpu.memory_space<vmem>>, %arg7: memref<128x128xbf16, #tpu.memory_space<vmem>>, %arg8: memref<128x128xf32, #tpu.memory_space<vmem>>) attributes {dimension_semantics = [#tpu.dimension_semantics<parallel>, #tpu.dimension_semantics<parallel>, #tpu.dimension_semantics<arbitrary>], iteration_bounds = array<i64: 1, 1, 1>, scalar_prefetch = 0 : i64, scratch_operands = 1 : i64, tpu.core_type = #tpu.core_type<tc>, window_params = [{transform_indices = @transform_0, window_bounds = array<i64: 128, 147>}, {transform_indices = @transform_1, window_bounds = array<i64: 147, 128>}, {transform_indices = @transform_2, window_bounds = array<i64: 1, 128>}, {transform_indices = @transform_3, window_bounds = array<i64: 1, 128>}, {transform_indices = @transform_4, window_bounds = array<i64: 128, 128>}]} {
    %c0_i32 = arith.constant 0 : i32
    %0 = arith.cmpi eq, %arg2, %c0_i32 : i32
    %1 = arith.extui %0 : i1 to i32
    %c0_i32_0 = arith.constant 0 : i32
    %2 = arith.cmpi ne, %1, %c0_i32_0 : i32
    scf.if %2 {
      %cst_10 = arith.constant 0.000000e+00 : f32
      %12 = vector.broadcast %cst_10 : f32 to vector<128x128xf32>
      %c0_11 = arith.constant 0 : index
      %c0_12 = arith.constant 0 : index
      %13 = vector.load %arg8[%c0_11, %c0_12] : memref<128x128xf32, #tpu.memory_space<vmem>>, vector<128x128xf32>
      tpu.vector_store %arg8[%c0_11, %c0_12], %12 {strides = array<i32>} : memref<128x128xf32, #tpu.memory_space<vmem>>, vector<128x128xf32>,
    } else {
    }
    %c0 = arith.constant 0 : index
    %c0_1 = arith.constant 0 : index
    %3 = vector.load %arg8[%c0, %c0_1] : memref<128x128xf32, #tpu.memory_space<vmem>>, vector<128x128xf32>
    %c0_2 = arith.constant 0 : index
    %c0_3 = arith.constant 0 : index
    %4 = vector.load %arg3[%c0_2, %c0_3] : memref<128x147xbf16, #tpu.memory_space<vmem>>, vector<128x147xbf16>
    %c0_4 = arith.constant 0 : index
    %c0_5 = arith.constant 0 : index
    %5 = vector.load %arg4[%c0_4, %c0_5] : memref<147x128xbf16, #tpu.memory_space<vmem>>, vector<147x128xbf16>
    %cst = arith.constant dense<0.000000e+00> : vector<128x128xf32>
    %6 = tpu.matmul %4, %5, %cst {dimension_numbers = #tpu.dot_dimension_numbers<[1], [0], [0], [1], [0, 0, 1, 1], [], []>} : vector<128x147xbf16>, vector<147x128xbf16>, vector<128x128xf32> -> vector<128x128xf32>
    %7 = arith.addf %3, %6 : vector<128x128xf32>
    %c0_6 = arith.constant 0 : index
    %c0_7 = arith.constant 0 : index
    %8 = vector.load %arg8[%c0_6, %c0_7] : memref<128x128xf32, #tpu.memory_space<vmem>>, vector<128x128xf32>
    tpu.vector_store %arg8[%c0_6, %c0_7], %7 {strides = array<i32>} : memref<128x128xf32, #tpu.memory_space<vmem>>, vector<128x128xf32>,
    %c0_i32_8 = arith.constant 0 : i32
    %9 = arith.cmpi eq, %arg2, %c0_i32_8 : i32
    %10 = arith.extui %9 : i1 to i32
    %c0_i32_9 = arith.constant 0 : i32
    %11 = arith.cmpi ne, %10, %c0_i32_9 : i32
    scf.if %11 {
      %c0_10 = arith.constant 0 : index
      %c0_11 = arith.constant 0 : index
      %12 = vector.load %arg8[%c0_10, %c0_11] : memref<128x128xf32, #tpu.memory_space<vmem>>, vector<128x128xf32>
      %c0_12 = arith.constant 0 : index
      %c0_13 = arith.constant 0 : index
      %13 = vector.load %arg5[%c0_12, %c0_13] : memref<1x128xf32, #tpu.memory_space<vmem>>, vector<1x128xf32>
      %14 = vector.broadcast %13 : vector<1x128xf32> to vector<128x128xf32>
      %15 = arith.mulf %12, %14 : vector<128x128xf32>
      %c0_14 = arith.constant 0 : index
      %c0_15 = arith.constant 0 : index
      %16 = vector.load %arg6[%c0_14, %c0_15] : memref<1x128xf32, #tpu.memory_space<vmem>>, vector<1x128xf32>
      %17 = vector.broadcast %16 : vector<1x128xf32> to vector<128x128xf32>
      %18 = arith.addf %15, %17 : vector<128x128xf32>
      %cst_16 = arith.constant 0.000000e+00 : f32
      %19 = vector.broadcast %cst_16 : f32 to vector<128x128xf32>
      %20 = arith.maximumf %18, %19 : vector<128x128xf32>
      %21 = arith.truncf %20 : vector<128x128xf32> to vector<128x128xbf16>
      %c0_17 = arith.constant 0 : index
      %c0_18 = arith.constant 0 : index
      %22 = vector.load %arg7[%c0_17, %c0_18] : memref<128x128xbf16, #tpu.memory_space<vmem>>, vector<128x128xbf16>
      tpu.vector_store %arg7[%c0_17, %c0_18], %21 {strides = array<i32>} : memref<128x128xbf16, #tpu.memory_space<vmem>>, vector<128x128xbf16>,
    } else {
    }
    return
  }
  func.func @transform_0(%arg0: i32, %arg1: i32, %arg2: i32) -> (i32, i32) {
    %c0_i32 = arith.constant 0 : i32
    return %arg0, %arg2 : i32, i32
  }
  func.func @transform_1(%arg0: i32, %arg1: i32, %arg2: i32) -> (i32, i32) {
    %c0_i32 = arith.constant 0 : i32
    return %arg2, %arg1 : i32, i32
  }
  func.func @transform_2(%arg0: i32, %arg1: i32, %arg2: i32) -> (i32, i32) {
    %c0_i32 = arith.constant 0 : i32
    %c0_i32_0 = arith.constant 0 : i32
    return %c0_i32, %arg1 : i32, i32
  }
  func.func @transform_3(%arg0: i32, %arg1: i32, %arg2: i32) -> (i32, i32) {
    %c0_i32 = arith.constant 0 : i32
    %c0_i32_0 = arith.constant 0 : i32
    return %c0_i32, %arg1 : i32, i32
  }
  func.func @transform_4(%arg0: i32, %arg1: i32, %arg2: i32) -> (i32, i32) {
    %c0_i32 = arith.constant 0 : i32
    return %arg0, %arg1 : i32, i32
  }
}

</mosaic_0001>

<bundles_post_ra>
// kernel: fused_matmul.1
= control target key start
LH: loop header
LB: loop body
LE: loop exit
PB: predicated region body
PF: predicated region fallthrough
CT: control target
= control target key end

     0   :  { %v753_v1 = vmov 0   ;;  %vm219_vm0 = vcmask 154624   ;;  %s914_s0 = inlined_call_operand.vmem [shape: bf16[128,147], index: 0, kind: input, shape index: {}]   ;;  %s915_s1 = inlined_call_operand.vmem [shape: bf16[147,128], index: 1, kind: input, shape index: {}]   ;;  %s916_s2 = inlined_call_operand.vmem [shape: f32[1,128], index: 2, kind: input, shape index: {}]   ;;  %s917_s3 = inlined_call_operand.vmem [shape: f32[1,128], index: 3, kind: input, shape index: {}]   ;;  %s918_s4 = inlined_call_operand.hbm [shape: bf16[128,128], index: 4, kind: output, shape index: {}]  }
   0x1   :  { %v697_v0 = vld [vmem:[%s915_s1 + $0x38] sm:$0xff]   ;;  %251 = vmatprep.subr.bf16.mxu0 %v753_v1  ;;  %672 = vmatprep.subr.bf16.mxu1 %v753_v1  ;;  %v698_v2 = vld [vmem:[%s915_s1 + $0x30] sm:$0xff]   ;;  %v699_v3 = vld [vmem:[%s915_s1 + $0x28] sm:$0xff]  }
   0x2   :  { %252 = vmatpush1.bf16.msra.mxu0 %v697_v0  ;;  %682 = vmatpush1.bf16.msra.mxu1 %v697_v0  ;;  %v700_v4 = vld [vmem:[%s915_s1 + $0x20] sm:$0xff]   ;;  %v701_v7 = vld [vmem:[%s915_s1 + $0x18] sm:$0xff]   ;;  %v702_v8 = vld [vmem:[%s915_s1 + $0x10] sm:$0xff]  }
   0x3   :  { %253 = vmatprep.subr.bf16.mxu0 %v753_v1  ;;  %673 = vmatprep.subr.bf16.mxu1 %v753_v1  ;;  %v709_v5 = vld [vmem:[%s914_s0 + $0x4] ss:$8 sps:$4 sm:$0xff]  }
   0x4   :  { %583 = vmatprep.mubr.msk.bf16.mxu0 %vm219_vm0, %v709_v5  ;;  %v712_v6 = vld [vmem:[%s914_s0 + $0x44] ss:$8 sps:$4 sm:$0xff]  }
   0x5   :  { %587 = vmatprep.mubr.msk.bf16.mxu1 %vm219_vm0, %v712_v6 }
   0x6   :  { %254 = vmatpush1.bf16.msra.mxu0 %v698_v2  ;;  %683 = vmatpush1.bf16.msra.mxu1 %v698_v2 }
   0x7   :  { %255 = vmatprep.subr.bf16.mxu0 %v753_v1  ;;  %674 = vmatprep.subr.bf16.mxu1 %v753_v1 }
   0xa   :  { %256 = vmatpush1.bf16.msra.mxu0 %v699_v3  ;;  %684 = vmatpush1.bf16.msra.mxu1 %v699_v3 }
   0xb   :  { %257 = vmatprep.subr.bf16.mxu0 %v753_v1  ;;  %675 = vmatprep.subr.bf16.mxu1 %v753_v1 }
   0xe   :  { %258 = vmatpush1.bf16.msra.mxu0 %v700_v4  ;;  %685 = vmatpush1.bf16.msra.mxu1 %v700_v4 }
   0xf   :  { %259 = vmatprep.subr.bf16.mxu0 %v753_v1  ;;  %676 = vmatprep.subr.bf16.mxu1 %v753_v1 }
  0x12   :  { %260 = vmatpush1.bf16.msra.mxu0 %v701_v7  ;;  %686 = vmatpush1.bf16.msra.mxu1 %v701_v7 }
  0x13   :  { %261 = vmatprep.subr.bf16.mxu0 %v753_v1  ;;  %677 = vmatprep.subr.bf16.mxu1 %v753_v1 }
  0x14   :  { %9 = vsyncpa [#allocation4], 0  ;;  %vm244_vm1 = vcmask 1040384   ;;  %v703_v9 = vld [vmem:[%s915_s1 + $0x8] sm:$0xff]   ;;  %vm245_vm2 = vcmask 1041408   ;;  %v754_v10 = vmov 65535  }
  0x15   :  { %v246_v11 = vsel %vm244_vm1, 4294967295, %v754_v10  ;;  %v704_v12 = vld [vmem:[%s915_s1] sm:$0xff]   ;;  %v705_v13 = vld [vmem:[%s915_s1 + $0x48] ss:$0 sps:$4 sm:$0x33]  }
  0x16   :  { %262 = vmatpush1.bf16.msra.mxu0 %v702_v8  ;;  %687 = vmatpush1.bf16.msra.mxu1 %v702_v8  ;;  %v247_v14 = vsel %vm245_vm2, %v246_v11, 0  ;;  %v706_v16 = vld [vmem:[%s915_s1 + $0x40] sm:$0xff]   ;;  %v713_v19 = vld [vmem:[%s914_s0 + $0x14] ss:$8 sps:$4 sm:$0xff]   ;;  %v717_v21 = vld [vmem:[%s914_s0 + $0x10] ss:$8 sps:$4 sm:$0xff]  }
  0x17   :  { %263 = vmatprep.subr.bf16.mxu0 %v753_v1  ;;  %678 = vmatprep.subr.bf16.mxu1 %v753_v1  ;;  %v249_v15 = vand.u32 %v705_v13, %v247_v14  ;;  %v707_v17 = vld [vmem:[%s914_s0] ss:$8 sps:$4 sm:$0xff]   ;;  %v715_v20 = vld [vmem:[%s914_s0 + $0x54] ss:$8 sps:$4 sm:$0xff]   ;;  %v718_v22 = vld [vmem:[%s914_s0 + $0x50] ss:$8 sps:$4 sm:$0xff]  }
  0x18   :  { %v710_v18 = vld [vmem:[%s914_s0 + $0x40] ss:$8 sps:$4 sm:$0xff]   ;;  %v719_v23 = vld [vmem:[%s914_s0 + $0x24] ss:$8 sps:$4 sm:$0xff]   ;;  %v725_v27 = vld [vmem:[%s914_s0 + $0x34] ss:$8 sps:$4 sm:$0xff]  }
  0x19   :  { %v721_v24 = vld [vmem:[%s914_s0 + $0x64] ss:$8 sps:$4 sm:$0xff]   ;;  %v723_v25 = vld [vmem:[%s914_s0 + $0x20] ss:$8 sps:$4 sm:$0xff]   ;;  %v727_v28 = vld [vmem:[%s914_s0 + $0x74] ss:$8 sps:$4 sm:$0xff]  }
  0x1a   :  { %264 = vmatpush1.bf16.msra.mxu0 %v703_v9  ;;  %688 = vmatpush1.bf16.msra.mxu1 %v703_v9  ;;  %v724_v26 = vld [vmem:[%s914_s0 + $0x60] ss:$8 sps:$4 sm:$0xff]   ;;  %v729_v29 = vld [vmem:[%s914_s0 + $0x30] ss:$8 sps:$4 sm:$0xff]  }
  0x1b   :  { %265 = vmatprep.subr.bf16.mxu0 %v753_v1  ;;  %679 = vmatprep.subr.bf16.mxu1 %v753_v1  ;;  %v730_v30 = vld [vmem:[%s914_s0 + $0x70] ss:$8 sps:$4 sm:$0xff]   ;;  %v872_v31 = vld [vmem:[%s916_s2] ss:$0 sm:$0xff]  ;;  %s755_s0 = smov [#allocation3]  }
  0x1c   :  { %v878_v35 = vld [vmem:[%s917_s3] ss:$0 sm:$0xff]  ;;  %s546_s2 = sshll.u32 %s755_s0, 4  ;;  %s547_s2 = int_to_ptr.vmem [resolvable:$true] %s546_s2 }
  0x1d   :  { %s731_s3 = scalar_lea.vmem %s547_s2, 1024  ;;  %p736_p1 = scmp.lt.s32.totalorder %s547_s2, %s547_s2 }
  0x1e   :  { %266 = vmatpush1.bf16.msra.mxu0 %v704_v12  ;;  %689 = vmatpush1.bf16.msra.mxu1 %v704_v12  ;;  %p732_p0 = scmp.ne.s32.totalorder %s547_s2, %s731_s3  ;;  %p737_p2 = scmp.lt.s32.totalorder %s731_s3, %s731_s3 }
  0x1f   :  { %279 = vmatprep.subr.bf16.mxu0 %v753_v1  ;;  %680 = vmatprep.subr.bf16.mxu1 %v753_v1 }
  0x20   :  { %p738_p3 = por %p737_p2, %p736_p1 }
  0x22   :  { %280 = vmatpush2.bf16.msra.mxu0 %v249_v15  ;;  %690 = vmatpush2.bf16.msra.mxu1 %v249_v15  ;;  %p739_p4 = pnand %p738_p3, %p732_p0 }
  0x23   :  { %281 = vmatprep.subr.bf16.mxu0 %v753_v1  ;;  %681 = vmatprep.subr.bf16.mxu1 %v753_v1 }
  0x26   :  { %282 = vmatpush2.bf16.msra.mxu0 %v706_v16  ;;  %691 = vmatpush2.bf16.msra.mxu1 %v706_v16 }
  0x29   :  { %284 = vmatmul.mubr.bf16.vlgmr.msra.gmra.mxu0 %v707_v17  ;;  %316 = vmatmul.mubr.bf16.vlgmr.msra.gmra.mxu1 %v710_v18 }
  0x2a   :  { %584 = vmatprep.mubr.msk.bf16.mxu0 %vm219_vm0, %v713_v19  ;;  %588 = vmatprep.mubr.msk.bf16.mxu1 %vm219_vm0, %v715_v20 }
  0x31   :  { %292 = vmatmul.mubr.bf16.gmra.mxu0 %v717_v21  ;;  %324 = vmatmul.mubr.bf16.gmra.mxu1 %v718_v22 }
  0x32   :  { %585 = vmatprep.mubr.msk.bf16.mxu0 %vm219_vm0, %v719_v23  ;;  %589 = vmatprep.mubr.msk.bf16.mxu1 %vm219_vm0, %v721_v24 }
  0x39   :  { %300 = vmatmul.mubr.bf16.gmra.mxu0 %v723_v25  ;;  %332 = vmatmul.mubr.bf16.gmra.mxu1 %v724_v26 }
  0x3a   :  { %586 = vmatprep.mubr.msk.bf16.mxu0 %vm219_vm0, %v725_v27  ;;  %590 = vmatprep.mubr.msk.bf16.mxu1 %vm219_vm0, %v727_v28 }
  0x41   :  { %308 = vmatmul.mubr.bf16.gmra.mxu0 %v729_v29  ;;  %340 = vmatmul.mubr.bf16.gmra.mxu1 %v730_v30 }
  0xe9   :  { %v285_v32 = vpop.f32.mrf.mxu0  ;;  %v317_v33 = vpop.f32.mrf.mxu1 }
  0xea   :  { %v406_v34 = vmul.f32 %v872_v31, %v285_v32  ;;  %v414_v36 = vmul.f32 %v872_v31, %v317_v33 }
  0xeb   :  { %v287_v37 = vpop.f32.mrf.mxu0  ;;  %v319_v38 = vpop.f32.mrf.mxu1 }
  0xec   :  { %v429_v39 = vadd.f32 %v878_v35, %v406_v34  ;;  %v437_v40 = vadd.f32 %v878_v35, %v414_v36 }
  0xed   :  { %v288_v41 = vpop.f32.mrf.mxu0  ;;  %v320_v42 = vpop.f32.mrf.mxu1 }
  0xee   :  { %v407_v43 = vmul.f32 %v872_v31, %v288_v41  ;;  %v415_v44 = vmul.f32 %v872_v31, %v320_v42  ;;  %v445_v49 = vmax.f32 %v429_v39, 0.0  ;;  %v453_v50 = vmax.f32 %v437_v40, 0.0 }
  0xef   :  { %v290_v45 = vpop.f32.mrf.mxu0  ;;  %v322_v46 = vpop.f32.mrf.mxu1 }
  0xf0   :  { %v430_v47 = vadd.f32 %v878_v35, %v407_v43  ;;  %v438_v48 = vadd.f32 %v878_v35, %v415_v44 }
  0xf1   :  { %v293_v51 = vpop.f32.mrf.mxu0  ;;  %v325_v52 = vpop.f32.mrf.mxu1 }
  0xf2   :  { %v446_v53 = vmax.f32 %v430_v47, 0.0  ;;  %v454_v54 = vmax.f32 %v438_v48, 0.0  ;;  %v408_v55 = vmul.f32 %v872_v31, %v293_v51  ;;  %v416_v56 = vmul.f32 %v872_v31, %v325_v52 }
  0xf3   :  { %v295_v57 = vpop.f32.mrf.mxu0  ;;  %v327_v58 = vpop.f32.mrf.mxu1 }
  0xf4   :  { %v628_v59 = vpack.c.bf16 %v446_v53, %v445_v49  ;;  %v648_v60 = vpack.c.bf16 %v454_v54, %v453_v50  ;;  %v431_v61 = vadd.f32 %v878_v35, %v408_v55  ;;  %v439_v62 = vadd.f32 %v878_v35, %v416_v56 }
  0xf5   :  { %v296_v63 = vpop.f32.mrf.mxu0  ;;  %v328_v0 = vpop.f32.mrf.mxu1 }
  0xf6   :  { %629 = vst [vmem:[#allocation3] sm:$0xff] %v628_v59   ;;  %668 = vst [vmem:[#allocation3 + $0x20] sm:$0xff] %v648_v60   ;;  %v409_v1 = vmul.f32 %v872_v31, %v296_v63  ;;  %v417_v2 = vmul.f32 %v872_v31, %v328_v0  ;;  %v447_v7 = vmax.f32 %v431_v61, 0.0  ;;  %v455_v8 = vmax.f32 %v439_v62, 0.0 }
  0xf7   :  { %v298_v3 = vpop.f32.mrf.mxu0  ;;  %v330_v4 = vpop.f32.mrf.mxu1 }
  0xf8   :  { %v432_v5 = vadd.f32 %v878_v35, %v409_v1  ;;  %v440_v6 = vadd.f32 %v878_v35, %v417_v2 }
  0xf9   :  { %v301_v9 = vpop.f32.mrf.mxu0  ;;  %v333_v10 = vpop.f32.mrf.mxu1 }
  0xfa   :  { %v448_v11 = vmax.f32 %v432_v5, 0.0  ;;  %v456_v12 = vmax.f32 %v440_v6, 0.0  ;;  %v410_v13 = vmul.f32 %v872_v31, %v301_v9  ;;  %v418_v14 = vmul.f32 %v872_v31, %v333_v10 }
  0xfb   :  { %v303_v15 = vpop.f32.mrf.mxu0  ;;  %v335_v16 = vpop.f32.mrf.mxu1 }
  0xfc   :  { %v633_v17 = vpack.c.bf16 %v448_v11, %v447_v7  ;;  %v653_v18 = vpack.c.bf16 %v456_v12, %v455_v8  ;;  %v433_v19 = vadd.f32 %v878_v35, %v410_v13  ;;  %v441_v20 = vadd.f32 %v878_v35, %v418_v14 }
  0xfd   :  { %v304_v21 = vpop.f32.mrf.mxu0  ;;  %v336_v22 = vpop.f32.mrf.mxu1 }
  0xfe   :  { %665 = vst [vmem:[#allocation3 + $0x8] sm:$0xff] %v633_v17   ;;  %669 = vst [vmem:[#allocation3 + $0x28] sm:$0xff] %v653_v18   ;;  %v411_v23 = vmul.f32 %v872_v31, %v304_v21  ;;  %v419_v24 = vmul.f32 %v872_v31, %v336_v22  ;;  %v449_v29 = vmax.f32 %v433_v19, 0.0  ;;  %v457_v30 = vmax.f32 %v441_v20, 0.0 }
  0xff   :  { %v306_v25 = vpop.f32.mrf.mxu0  ;;  %v338_v26 = vpop.f32.mrf.mxu1 }
 0x100   :  { %v434_v27 = vadd.f32 %v878_v35, %v411_v23  ;;  %v442_v28 = vadd.f32 %v878_v35, %v419_v24 }
 0x101   :  { %v309_v32 = vpop.f32.mrf.mxu0  ;;  %v341_v33 = vpop.f32.mrf.mxu1 }
 0x102   :  { %v450_v34 = vmax.f32 %v434_v27, 0.0  ;;  %v458_v36 = vmax.f32 %v442_v28, 0.0  ;;  %v412_v37 = vmul.f32 %v872_v31, %v309_v32  ;;  %v420_v38 = vmul.f32 %v872_v31, %v341_v33 }
 0x103   :  { %v311_v39 = vpop.f32.mrf.mxu0  ;;  %v343_v40 = vpop.f32.mrf.mxu1 }
 0x104   :  { %v638_v41 = vpack.c.bf16 %v450_v34, %v449_v29  ;;  %v658_v42 = vpack.c.bf16 %v458_v36, %v457_v30  ;;  %v435_v45 = vadd.f32 %v878_v35, %v412_v37  ;;  %v443_v46 = vadd.f32 %v878_v35, %v420_v38 }
 0x105   :  { %v312_v43 = vpop.f32.mrf.mxu0  ;;  %v344_v44 = vpop.f32.mrf.mxu1 }
 0x106   :  { %666 = vst [vmem:[#allocation3 + $0x10] sm:$0xff] %v638_v41   ;;  %670 = vst [vmem:[#allocation3 + $0x30] sm:$0xff] %v658_v42   ;;  %v413_v47 = vmul.f32 %v872_v31, %v312_v43  ;;  %v421_v48 = vmul.f32 %v872_v31, %v344_v44  ;;  %v451_v53 = vmax.f32 %v435_v45, 0.0  ;;  %v459_v54 = vmax.f32 %v443_v46, 0.0 }
 0x107   :  { %v314_v49 = vpop.f32.mrf.mxu0  ;;  %v346_v50 = vpop.f32.mrf.mxu1 }
 0x108   :  { %v436_v51 = vadd.f32 %v878_v35, %v413_v47  ;;  %v444_v52 = vadd.f32 %v878_v35, %v421_v48 }
 0x10a   :  { %v452_v55 = vmax.f32 %v436_v51, 0.0  ;;  %v460_v56 = vmax.f32 %v444_v52, 0.0 }
 0x10c   :  { %v643_v57 = vpack.c.bf16 %v452_v55, %v451_v53  ;;  %v663_v58 = vpack.c.bf16 %v460_v56, %v459_v54 }
 0x10e   :  { %667 = vst [vmem:[#allocation3 + $0x18] sm:$0xff] %v643_v57   ;;  %671 = vst [vmem:[#allocation3 + $0x38] sm:$0xff] %v663_v58  }
 0x10f   :  { %742 = shalt.err (!%p739_p4)
}
 0x110   :  { %s756_s18 = smov 64   ;;  %s757_s19 = smov 4  }
 0x111   :  { %552 = dma.vmem_to_hbm [thread:$0]  %s547_s2, 1024, %s918_s4, [#allocation4], %s756_s18, %s756_s18, %s757_s19  }
 0x112   :  { %751 = dma.done.wait [#allocation4], 1024  }
 0x113   :  { %752 = vsyncadd [#allocation4], 4294966272 }
 0x114   :  { %556 = vsyncpa [#allocation4], 1 }

</bundles_post_ra>
